<compile_context>
chip_gen: v6e
topology: v6e:2x2x1
jax: 0.10.0
libtpu: 0.0.40
codegen_flags: <defaults>
</compile_context>

<pallas_src>
import functools

import jax
import jax.numpy as jnp
from jax.experimental import pallas as pl
from jax.experimental.pallas import tpu as pltpu


def _round_up(x, m):
    return ((x + m - 1) // m) * m


def _angle_head_kernel(
    s_ref, si_ref,                         # (tile_m, d_s_p) f32 token tiles
    w_s_ref, w_i_ref, b_in_ref,            # input projections (bf16 W, f32 b)
    w11_ref, b11_ref, w12_ref, b12_ref,    # mlp-1
    w21_ref, b21_ref, w22_ref, b22_ref,    # mlp-2
    w3_ref, b3_ref,                        # mlp-3 (output lanes padded to 128)
    out_ref,                               # (tile_m, d_out_p) f32
):
    f32, bf16 = jnp.float32, jnp.bfloat16

    # hfea = linear-s(sfcd) + linear-i(sfcd_init): two bf16 MXU calls, f32 acc.
    h = (jnp.dot(s_ref[...].astype(bf16), w_s_ref[...], preferred_element_type=f32)
         + jnp.dot(si_ref[...].astype(bf16), w_i_ref[...], preferred_element_type=f32)
         + b_in_ref[...])

    # mlp-1: ReLU -> Linear -> ReLU -> Linear, residual add (f32 elementwise)
    t = jnp.maximum(h, 0.0).astype(bf16)
    t = jnp.dot(t, w11_ref[...], preferred_element_type=f32) + b11_ref[...]
    t = jnp.maximum(t, 0.0).astype(bf16)
    t = jnp.dot(t, w12_ref[...], preferred_element_type=f32) + b12_ref[...]
    h = h + t

    # mlp-2: ReLU -> Linear -> ReLU -> Linear, residual add
    t = jnp.maximum(h, 0.0).astype(bf16)
    t = jnp.dot(t, w21_ref[...], preferred_element_type=f32) + b21_ref[...]
    t = jnp.maximum(t, 0.0).astype(bf16)
    t = jnp.dot(t, w22_ref[...], preferred_element_type=f32) + b22_ref[...]
    h = h + t

    # mlp-3: ReLU -> Linear(hidden -> 128 padded output lanes), lane-dense store
    t = jnp.maximum(h, 0.0).astype(bf16)
    out_ref[...] = (jnp.dot(t, w3_ref[...], preferred_element_type=f32)
                    + b3_ref[...]).astype(out_ref.dtype)


def prepare_params(params, *, num_angles=7, weight_dtype=jnp.bfloat16):
    """One-time preprocessing: pad weights to 128-lane multiples, fuse the two
    input biases, and pre-cast weights to bf16.  Biases stay f32."""
    d_s, d_h = params["w_s"].shape
    d_out = num_angles * 2
    d_s_p = _round_up(d_s, 128)
    d_h_p = _round_up(d_h, 128)
    d_out_p = _round_up(d_out, 128)

    def pad_w(w, rows, cols):
        w = jnp.asarray(w, jnp.float32)
        w = jnp.pad(w, ((0, rows - w.shape[0]), (0, cols - w.shape[1])))
        return w.astype(weight_dtype)

    def pad_b(b, cols):
        b = jnp.asarray(b, jnp.float32).reshape(1, -1)
        return jnp.pad(b, ((0, 0), (0, cols - b.shape[1])))

    return {
        "w_s": pad_w(params["w_s"], d_s_p, d_h_p),
        "w_i": pad_w(params["w_i"], d_s_p, d_h_p),
        "b_in": pad_b(params["b_s"] + params["b_i"], d_h_p),
        "w_11": pad_w(params["w_11"], d_h_p, d_h_p),
        "b_11": pad_b(params["b_11"], d_h_p),
        "w_12": pad_w(params["w_12"], d_h_p, d_h_p),
        "b_12": pad_b(params["b_12"], d_h_p),
        "w_21": pad_w(params["w_21"], d_h_p, d_h_p),
        "b_21": pad_b(params["b_21"], d_h_p),
        "w_22": pad_w(params["w_22"], d_h_p, d_h_p),
        "b_22": pad_b(params["b_22"], d_h_p),
        "w_3": pad_w(params["w_3"], d_h_p, d_out_p),
        "b_3": pad_b(params["b_3"], d_out_p),
    }


@functools.partial(jax.jit, static_argnames=("num_angles", "tile_m"))
def angle_head_forward(sfcd, sfcd_init, prepared, *, num_angles=7, tile_m=512):
    """sfcd, sfcd_init: (N, L, D_s) -> (N, L, num_angles, 2) float32."""
    n, l, d_s = sfcd.shape
    d_s_p, d_h_p = prepared["w_s"].shape
    d_out_p = prepared["w_3"].shape[1]
    d_out = num_angles * 2
    m = n * l
    f32 = jnp.float32

    # --- token tiling -------------------------------------------------------
    m8 = _round_up(max(m, 1), 8)
    tile = max(8, min(_round_up(tile_m, 8), m8))
    # Ensure >= 2 grid steps whenever M allows so the ("parallel",) axis can be
    # sharded across both v7x TensorCores (no effect on v5e/v6e correctness).
    if _round_up(m, tile) // tile < 2 and m8 >= 16:
        tile = _round_up(m8 // 2, 8)
    m_pad = _round_up(m, tile)
    grid_m = m_pad // tile

    # --- inputs: two separate token-major slabs, lane/row padded only if
    #     needed (no concat; zero-pad is a no-op when D_s % 128 == 0 and
    #     M % tile == 0).  PyTorch's dtype-mismatch cast branch is not
    #     exercised (everything is f32 here).
    s2d = sfcd.reshape(m, d_s).astype(f32)
    si2d = sfcd_init.reshape(m, d_s).astype(f32)
    pad_rows, pad_cols = m_pad - m, d_s_p - d_s
    if pad_rows or pad_cols:
        s2d = jnp.pad(s2d, ((0, pad_rows), (0, pad_cols)))
        si2d = jnp.pad(si2d, ((0, pad_rows), (0, pad_cols)))

    # Weights/biases: full blocks, constant index_map -> resident across grid.
    def full_spec(shape):
        return pl.BlockSpec(shape, lambda i: tuple(0 for _ in shape))

    in_specs = [
        pl.BlockSpec((tile, d_s_p), lambda i: (i, 0)),            # sfcd tile
        pl.BlockSpec((tile, d_s_p), lambda i: (i, 0)),            # sfcd_init tile
        full_spec((d_s_p, d_h_p)), full_spec((d_s_p, d_h_p)),     # W_s, W_i
        full_spec((1, d_h_p)),                                    # b_s + b_i
        full_spec((d_h_p, d_h_p)), full_spec((1, d_h_p)),         # mlp-1 layer 1
        full_spec((d_h_p, d_h_p)), full_spec((1, d_h_p)),         # mlp-1 layer 2
        full_spec((d_h_p, d_h_p)), full_spec((1, d_h_p)),         # mlp-2 layer 1
        full_spec((d_h_p, d_h_p)), full_spec((1, d_h_p)),         # mlp-2 layer 2
        full_spec((d_h_p, d_out_p)), full_spec((1, d_out_p)),     # mlp-3
    ]
    out_spec = pl.BlockSpec((tile, d_out_p), lambda i: (i, 0))

    out2d = pl.pallas_call(
        _angle_head_kernel,
        out_shape=jax.ShapeDtypeStruct((m_pad, d_out_p), f32),
        grid_spec=pltpu.PrefetchScalarGridSpec(
            num_scalar_prefetch=0,
            grid=(grid_m,),
            in_specs=in_specs,
            out_specs=out_spec,
        ),
        compiler_params=pltpu.CompilerParams(
            dimension_semantics=("parallel",),
            # Fits comfortably even at tile_m=1024 and stays well inside the
            # 64 MiB/TC VMEM ceiling on v7x (don't scale this with tile_m).
            vmem_limit_bytes=32 * 1024 * 1024,
        ),
    )(
        s2d, si2d,
        prepared["w_s"], prepared["w_i"], prepared["b_in"],
        prepared["w_11"], prepared["b_11"], prepared["w_12"], prepared["b_12"],
        prepared["w_21"], prepared["b_21"], prepared["w_22"], prepared["b_22"],
        prepared["w_3"], prepared["b_3"],
    )

    # Strip token + lane padding and reshape to (N, L, K, 2).  Downstream
    # consumers that accept the padded (m_pad, 128) slab can skip this slice.
    return out2d[:m, :d_out].reshape(n, l, num_angles, 2)


def init_params(key, d_s, d_h, num_angles=7):
    """Deterministic synthetic parameters (stored as (in, out) matrices)."""
    d_out = num_angles * 2
    keys = jax.random.split(key, 14)
    scale_s = 1.0 / jnp.sqrt(d_s)
    scale_h = 1.0 / jnp.sqrt(d_h)

    def w(k, shape, scale):
        return (scale * jax.random.normal(k, shape)).astype(jnp.float32)

    return {
        "w_s": w(keys[0], (d_s, d_h), scale_s),
        "b_s": w(keys[1], (1, d_h), scale_s),
        "w_i": w(keys[2], (d_s, d_h), scale_s),
        "b_i": w(keys[3], (1, d_h), scale_s),
        "w_11": w(keys[4], (d_h, d_h), scale_h),
        "b_11": w(keys[5], (1, d_h), scale_h),
        "w_12": w(keys[6], (d_h, d_h), scale_h),
        "b_12": w(keys[7], (1, d_h), scale_h),
        "w_21": w(keys[8], (d_h, d_h), scale_h),
        "b_21": w(keys[9], (1, d_h), scale_h),
        "w_22": w(keys[10], (d_h, d_h), scale_h),
        "b_22": w(keys[11], (1, d_h), scale_h),
        "w_3": w(keys[12], (d_h, d_out), scale_h),
        "b_3": w(keys[13], (1, d_out), scale_h),
    }


def reference_forward(sfcd, sfcd_init, params, num_angles=7):
    """Pure-JAX f32 reference matching the PyTorch forward."""
    n, l, _ = sfcd.shape
    h = (sfcd @ params["w_s"] + params["b_s"][0]
         + sfcd_init @ params["w_i"] + params["b_i"][0])
    t = jax.nn.relu(h) @ params["w_11"] + params["b_11"][0]
    t = jax.nn.relu(t) @ params["w_12"] + params["b_12"][0]
    h = h + t
    t = jax.nn.relu(h) @ params["w_21"] + params["b_21"][0]
    t = jax.nn.relu(t) @ params["w_22"] + params["b_22"][0]
    h = h + t
    out = jax.nn.relu(h) @ params["w_3"] + params["b_3"][0]
    return out.reshape(n, l, num_angles, 2)


if __name__ == "__main__":
    # Small shapes: N=2 samples, L=8 residues, D_s=32 single-feature dims,
    # D_h=32 hidden dims, 7 torsion angles x 2 (sin, cos).
    N, L, D_S, D_H, K = 2, 8, 32, 32, 7

    key = jax.random.PRNGKey(0)
    k_p, k_s, k_i = jax.random.split(key, 3)
    params = init_params(k_p, D_S, D_H, num_angles=K)
    sfcd = jax.random.normal(k_s, (N, L, D_S), dtype=jnp.float32)
    sfcd_init = jax.random.normal(k_i, (N, L, D_S), dtype=jnp.float32)

    # One-time weight preprocessing (pad to 128-lane tiles, fuse b_s+b_i, bf16).
    prepared = jax.tree_util.tree_map(jax.block_until_ready,
                                      prepare_params(params, num_angles=K))

    angl = angle_head_forward(sfcd, sfcd_init, prepared, num_angles=K)
    angl = jax.block_until_ready(angl)

    ref = reference_forward(sfcd, sfcd_init, params, num_angles=K)
    assert angl.shape == (N, L, K, 2), angl.shape
    # bf16 MXU operands (f32 accumulation) -> relaxed tolerance vs f32 reference.
    assert jnp.allclose(angl, ref, atol=5e-2, rtol=5e-2), (
        "mismatch vs reference, max abs err = %f"
        % float(jnp.max(jnp.abs(angl - ref))))

    print("KERNEL_OK")
</pallas_src>

<mosaic_0001>
module attributes {stable_mosaic.version = 11 : i64} {
  func.func @_angle_head_kernel(%arg0: i32, %arg1: memref<8x128xf32, #tpu.memory_space<vmem>>, %arg2: memref<8x128xf32, #tpu.memory_space<vmem>>, %arg3: memref<128x128xbf16, #tpu.memory_space<vmem>>, %arg4: memref<128x128xbf16, #tpu.memory_space<vmem>>, %arg5: memref<1x128xf32, #tpu.memory_space<vmem>>, %arg6: memref<128x128xbf16, #tpu.memory_space<vmem>>, %arg7: memref<1x128xf32, #tpu.memory_space<vmem>>, %arg8: memref<128x128xbf16, #tpu.memory_space<vmem>>, %arg9: memref<1x128xf32, #tpu.memory_space<vmem>>, %arg10: memref<128x128xbf16, #tpu.memory_space<vmem>>, %arg11: memref<1x128xf32, #tpu.memory_space<vmem>>, %arg12: memref<128x128xbf16, #tpu.memory_space<vmem>>, %arg13: memref<1x128xf32, #tpu.memory_space<vmem>>, %arg14: memref<128x128xbf16, #tpu.memory_space<vmem>>, %arg15: memref<1x128xf32, #tpu.memory_space<vmem>>, %arg16: memref<8x128xf32, #tpu.memory_space<vmem>>) attributes {dimension_semantics = [#tpu.dimension_semantics<parallel>], iteration_bounds = array<i64: 2>, scalar_prefetch = 0 : i64, scratch_operands = 0 : i64, tpu.core_type = #tpu.core_type<tc>, window_params = [{transform_indices = @transform_0, window_bounds = array<i64: 8, 128>}, {transform_indices = @transform_1, window_bounds = array<i64: 8, 128>}, {pipeline_mode = #tpu.pipeline_mode<synchronous>, transform_indices = @transform_2, window_bounds = array<i64: 128, 128>}, {pipeline_mode = #tpu.pipeline_mode<synchronous>, transform_indices = @transform_3, window_bounds = array<i64: 128, 128>}, {pipeline_mode = #tpu.pipeline_mode<synchronous>, transform_indices = @transform_4, window_bounds = array<i64: 1, 128>}, {pipeline_mode = #tpu.pipeline_mode<synchronous>, transform_indices = @transform_5, window_bounds = array<i64: 128, 128>}, {pipeline_mode = #tpu.pipeline_mode<synchronous>, transform_indices = @transform_6, window_bounds = array<i64: 1, 128>}, {pipeline_mode = #tpu.pipeline_mode<synchronous>, transform_indices = @transform_7, window_bounds = array<i64: 128, 128>}, {pipeline_mode = #tpu.pipeline_mode<synchronous>, transform_indices = @transform_8, window_bounds = array<i64: 1, 128>}, {pipeline_mode = #tpu.pipeline_mode<synchronous>, transform_indices = @transform_9, window_bounds = array<i64: 128, 128>}, {pipeline_mode = #tpu.pipeline_mode<synchronous>, transform_indices = @transform_10, window_bounds = array<i64: 1, 128>}, {pipeline_mode = #tpu.pipeline_mode<synchronous>, transform_indices = @transform_11, window_bounds = array<i64: 128, 128>}, {pipeline_mode = #tpu.pipeline_mode<synchronous>, transform_indices = @transform_12, window_bounds = array<i64: 1, 128>}, {pipeline_mode = #tpu.pipeline_mode<synchronous>, transform_indices = @transform_13, window_bounds = array<i64: 128, 128>}, {pipeline_mode = #tpu.pipeline_mode<synchronous>, transform_indices = @transform_14, window_bounds = array<i64: 1, 128>}, {transform_indices = @transform_15, window_bounds = array<i64: 8, 128>}]} {
    %c0 = arith.constant 0 : index
    %c0_0 = arith.constant 0 : index
    %0 = vector.load %arg1[%c0, %c0_0] : memref<8x128xf32, #tpu.memory_space<vmem>>, vector<8x128xf32>
    %1 = arith.truncf %0 : vector<8x128xf32> to vector<8x128xbf16>
    %c0_1 = arith.constant 0 : index
    %c0_2 = arith.constant 0 : index
    %2 = vector.load %arg3[%c0_1, %c0_2] : memref<128x128xbf16, #tpu.memory_space<vmem>>, vector<128x128xbf16>
    %cst = arith.constant dense<0.000000e+00> : vector<8x128xf32>
    %3 = tpu.matmul %1, %2, %cst {dimension_numbers = #tpu.dot_dimension_numbers<[1], [0], [0], [1], [0, 0, 1, 1], [], []>} : vector<8x128xbf16>, vector<128x128xbf16>, vector<8x128xf32> -> vector<8x128xf32>
    %c0_3 = arith.constant 0 : index
    %c0_4 = arith.constant 0 : index
    %4 = vector.load %arg2[%c0_3, %c0_4] : memref<8x128xf32, #tpu.memory_space<vmem>>, vector<8x128xf32>
    %5 = arith.truncf %4 : vector<8x128xf32> to vector<8x128xbf16>
    %c0_5 = arith.constant 0 : index
    %c0_6 = arith.constant 0 : index
    %6 = vector.load %arg4[%c0_5, %c0_6] : memref<128x128xbf16, #tpu.memory_space<vmem>>, vector<128x128xbf16>
    %cst_7 = arith.constant dense<0.000000e+00> : vector<8x128xf32>
    %7 = tpu.matmul %5, %6, %cst_7 {dimension_numbers = #tpu.dot_dimension_numbers<[1], [0], [0], [1], [0, 0, 1, 1], [], []>} : vector<8x128xbf16>, vector<128x128xbf16>, vector<8x128xf32> -> vector<8x128xf32>
    %8 = arith.addf %3, %7 : vector<8x128xf32>
    %c0_8 = arith.constant 0 : index
    %c0_9 = arith.constant 0 : index
    %9 = vector.load %arg5[%c0_8, %c0_9] : memref<1x128xf32, #tpu.memory_space<vmem>>, vector<1x128xf32>
    %10 = vector.broadcast %9 : vector<1x128xf32> to vector<8x128xf32>
    %11 = arith.addf %8, %10 : vector<8x128xf32>
    %cst_10 = arith.constant 0.000000e+00 : f32
    %12 = vector.broadcast %cst_10 : f32 to vector<8x128xf32>
    %13 = arith.maximumf %11, %12 : vector<8x128xf32>
    %14 = arith.truncf %13 : vector<8x128xf32> to vector<8x128xbf16>
    %c0_11 = arith.constant 0 : index
    %c0_12 = arith.constant 0 : index
    %15 = vector.load %arg6[%c0_11, %c0_12] : memref<128x128xbf16, #tpu.memory_space<vmem>>, vector<128x128xbf16>
    %cst_13 = arith.constant dense<0.000000e+00> : vector<8x128xf32>
    %16 = tpu.matmul %14, %15, %cst_13 {dimension_numbers = #tpu.dot_dimension_numbers<[1], [0], [0], [1], [0, 0, 1, 1], [], []>} : vector<8x128xbf16>, vector<128x128xbf16>, vector<8x128xf32> -> vector<8x128xf32>
    %c0_14 = arith.constant 0 : index
    %c0_15 = arith.constant 0 : index
    %17 = vector.load %arg7[%c0_14, %c0_15] : memref<1x128xf32, #tpu.memory_space<vmem>>, vector<1x128xf32>
    %18 = vector.broadcast %17 : vector<1x128xf32> to vector<8x128xf32>
    %19 = arith.addf %16, %18 : vector<8x128xf32>
    %cst_16 = arith.constant 0.000000e+00 : f32
    %20 = vector.broadcast %cst_16 : f32 to vector<8x128xf32>
    %21 = arith.maximumf %19, %20 : vector<8x128xf32>
    %22 = arith.truncf %21 : vector<8x128xf32> to vector<8x128xbf16>
    %c0_17 = arith.constant 0 : index
    %c0_18 = arith.constant 0 : index
    %23 = vector.load %arg8[%c0_17, %c0_18] : memref<128x128xbf16, #tpu.memory_space<vmem>>, vector<128x128xbf16>
    %cst_19 = arith.constant dense<0.000000e+00> : vector<8x128xf32>
    %24 = tpu.matmul %22, %23, %cst_19 {dimension_numbers = #tpu.dot_dimension_numbers<[1], [0], [0], [1], [0, 0, 1, 1], [], []>} : vector<8x128xbf16>, vector<128x128xbf16>, vector<8x128xf32> -> vector<8x128xf32>
    %c0_20 = arith.constant 0 : index
    %c0_21 = arith.constant 0 : index
    %25 = vector.load %arg9[%c0_20, %c0_21] : memref<1x128xf32, #tpu.memory_space<vmem>>, vector<1x128xf32>
    %26 = vector.broadcast %25 : vector<1x128xf32> to vector<8x128xf32>
    %27 = arith.addf %24, %26 : vector<8x128xf32>
    %28 = arith.addf %11, %27 : vector<8x128xf32>
    %cst_22 = arith.constant 0.000000e+00 : f32
    %29 = vector.broadcast %cst_22 : f32 to vector<8x128xf32>
    %30 = arith.maximumf %28, %29 : vector<8x128xf32>
    %31 = arith.truncf %30 : vector<8x128xf32> to vector<8x128xbf16>
    %c0_23 = arith.constant 0 : index
    %c0_24 = arith.constant 0 : index
    %32 = vector.load %arg10[%c0_23, %c0_24] : memref<128x128xbf16, #tpu.memory_space<vmem>>, vector<128x128xbf16>
    %cst_25 = arith.constant dense<0.000000e+00> : vector<8x128xf32>
    %33 = tpu.matmul %31, %32, %cst_25 {dimension_numbers = #tpu.dot_dimension_numbers<[1], [0], [0], [1], [0, 0, 1, 1], [], []>} : vector<8x128xbf16>, vector<128x128xbf16>, vector<8x128xf32> -> vector<8x128xf32>
    %c0_26 = arith.constant 0 : index
    %c0_27 = arith.constant 0 : index
    %34 = vector.load %arg11[%c0_26, %c0_27] : memref<1x128xf32, #tpu.memory_space<vmem>>, vector<1x128xf32>
    %35 = vector.broadcast %34 : vector<1x128xf32> to vector<8x128xf32>
    %36 = arith.addf %33, %35 : vector<8x128xf32>
    %cst_28 = arith.constant 0.000000e+00 : f32
    %37 = vector.broadcast %cst_28 : f32 to vector<8x128xf32>
    %38 = arith.maximumf %36, %37 : vector<8x128xf32>
    %39 = arith.truncf %38 : vector<8x128xf32> to vector<8x128xbf16>
    %c0_29 = arith.constant 0 : index
    %c0_30 = arith.constant 0 : index
    %40 = vector.load %arg12[%c0_29, %c0_30] : memref<128x128xbf16, #tpu.memory_space<vmem>>, vector<128x128xbf16>
    %cst_31 = arith.constant dense<0.000000e+00> : vector<8x128xf32>
    %41 = tpu.matmul %39, %40, %cst_31 {dimension_numbers = #tpu.dot_dimension_numbers<[1], [0], [0], [1], [0, 0, 1, 1], [], []>} : vector<8x128xbf16>, vector<128x128xbf16>, vector<8x128xf32> -> vector<8x128xf32>
    %c0_32 = arith.constant 0 : index
    %c0_33 = arith.constant 0 : index
    %42 = vector.load %arg13[%c0_32, %c0_33] : memref<1x128xf32, #tpu.memory_space<vmem>>, vector<1x128xf32>
    %43 = vector.broadcast %42 : vector<1x128xf32> to vector<8x128xf32>
    %44 = arith.addf %41, %43 : vector<8x128xf32>
    %45 = arith.addf %28, %44 : vector<8x128xf32>
    %cst_34 = arith.constant 0.000000e+00 : f32
    %46 = vector.broadcast %cst_34 : f32 to vector<8x128xf32>
    %47 = arith.maximumf %45, %46 : vector<8x128xf32>
    %48 = arith.truncf %47 : vector<8x128xf32> to vector<8x128xbf16>
    %c0_35 = arith.constant 0 : index
    %c0_36 = arith.constant 0 : index
    %49 = vector.load %arg14[%c0_35, %c0_36] : memref<128x128xbf16, #tpu.memory_space<vmem>>, vector<128x128xbf16>
    %cst_37 = arith.constant dense<0.000000e+00> : vector<8x128xf32>
    %50 = tpu.matmul %48, %49, %cst_37 {dimension_numbers = #tpu.dot_dimension_numbers<[1], [0], [0], [1], [0, 0, 1, 1], [], []>} : vector<8x128xbf16>, vector<128x128xbf16>, vector<8x128xf32> -> vector<8x128xf32>
    %c0_38 = arith.constant 0 : index
    %c0_39 = arith.constant 0 : index
    %51 = vector.load %arg15[%c0_38, %c0_39] : memref<1x128xf32, #tpu.memory_space<vmem>>, vector<1x128xf32>
    %52 = vector.broadcast %51 : vector<1x128xf32> to vector<8x128xf32>
    %53 = arith.addf %50, %52 : vector<8x128xf32>
    %c0_40 = arith.constant 0 : index
    %c0_41 = arith.constant 0 : index
    %54 = vector.load %arg16[%c0_40, %c0_41] : memref<8x128xf32, #tpu.memory_space<vmem>>, vector<8x128xf32>
    tpu.vector_store %arg16[%c0_40, %c0_41], %53 {strides = array<i32>} : memref<8x128xf32, #tpu.memory_space<vmem>>, vector<8x128xf32>,
    return
  }
  func.func @transform_0(%arg0: i32) -> (i32, i32) {
    %c0_i32 = arith.constant 0 : i32
    %c0_i32_0 = arith.constant 0 : i32
    return %arg0, %c0_i32 : i32, i32
  }
  func.func @transform_1(%arg0: i32) -> (i32, i32) {
    %c0_i32 = arith.constant 0 : i32
    %c0_i32_0 = arith.constant 0 : i32
    return %arg0, %c0_i32 : i32, i32
  }
  func.func @transform_2(%arg0: i32) -> (i32, i32) {
    %c0_i32 = arith.constant 0 : i32
    %c0_i32_0 = arith.constant 0 : i32
    %c0_i32_1 = arith.constant 0 : i32
    return %c0_i32, %c0_i32_0 : i32, i32
  }
  func.func @transform_3(%arg0: i32) -> (i32, i32) {
    %c0_i32 = arith.constant 0 : i32
    %c0_i32_0 = arith.constant 0 : i32
    %c0_i32_1 = arith.constant 0 : i32
    return %c0_i32, %c0_i32_0 : i32, i32
  }
  func.func @transform_4(%arg0: i32) -> (i32, i32) {
    %c0_i32 = arith.constant 0 : i32
    %c0_i32_0 = arith.constant 0 : i32
    %c0_i32_1 = arith.constant 0 : i32
    return %c0_i32, %c0_i32_0 : i32, i32
  }
  func.func @transform_5(%arg0: i32) -> (i32, i32) {
    %c0_i32 = arith.constant 0 : i32
    %c0_i32_0 = arith.constant 0 : i32
    %c0_i32_1 = arith.constant 0 : i32
    return %c0_i32, %c0_i32_0 : i32, i32
  }
  func.func @transform_6(%arg0: i32) -> (i32, i32) {
    %c0_i32 = arith.constant 0 : i32
    %c0_i32_0 = arith.constant 0 : i32
    %c0_i32_1 = arith.constant 0 : i32
    return %c0_i32, %c0_i32_0 : i32, i32
  }
  func.func @transform_7(%arg0: i32) -> (i32, i32) {
    %c0_i32 = arith.constant 0 : i32
    %c0_i32_0 = arith.constant 0 : i32
    %c0_i32_1 = arith.constant 0 : i32
    return %c0_i32, %c0_i32_0 : i32, i32
  }
  func.func @transform_8(%arg0: i32) -> (i32, i32) {
    %c0_i32 = arith.constant 0 : i32
    %c0_i32_0 = arith.constant 0 : i32
    %c0_i32_1 = arith.constant 0 : i32
    return %c0_i32, %c0_i32_0 : i32, i32
  }
  func.func @transform_9(%arg0: i32) -> (i32, i32) {
    %c0_i32 = arith.constant 0 : i32
    %c0_i32_0 = arith.constant 0 : i32
    %c0_i32_1 = arith.constant 0 : i32
    return %c0_i32, %c0_i32_0 : i32, i32
  }
  func.func @transform_10(%arg0: i32) -> (i32, i32) {
    %c0_i32 = arith.constant 0 : i32
    %c0_i32_0 = arith.constant 0 : i32
    %c0_i32_1 = arith.constant 0 : i32
    return %c0_i32, %c0_i32_0 : i32, i32
  }
  func.func @transform_11(%arg0: i32) -> (i32, i32) {
    %c0_i32 = arith.constant 0 : i32
    %c0_i32_0 = arith.constant 0 : i32
    %c0_i32_1 = arith.constant 0 : i32
    return %c0_i32, %c0_i32_0 : i32, i32
  }
  func.func @transform_12(%arg0: i32) -> (i32, i32) {
    %c0_i32 = arith.constant 0 : i32
    %c0_i32_0 = arith.constant 0 : i32
    %c0_i32_1 = arith.constant 0 : i32
    return %c0_i32, %c0_i32_0 : i32, i32
  }
  func.func @transform_13(%arg0: i32) -> (i32, i32) {
    %c0_i32 = arith.constant 0 : i32
    %c0_i32_0 = arith.constant 0 : i32
    %c0_i32_1 = arith.constant 0 : i32
    return %c0_i32, %c0_i32_0 : i32, i32
  }
  func.func @transform_14(%arg0: i32) -> (i32, i32) {
    %c0_i32 = arith.constant 0 : i32
    %c0_i32_0 = arith.constant 0 : i32
    %c0_i32_1 = arith.constant 0 : i32
    return %c0_i32, %c0_i32_0 : i32, i32
  }
  func.func @transform_15(%arg0: i32) -> (i32, i32) {
    %c0_i32 = arith.constant 0 : i32
    %c0_i32_0 = arith.constant 0 : i32
    return %arg0, %c0_i32 : i32, i32
  }
}

</mosaic_0001>

<bundles_post_ra>
// kernel: angle_head_forward.1
= control target key start
LH: loop header
LB: loop body
LE: loop exit
PB: predicated region body
PF: predicated region fallthrough
CT: control target
= control target key end

     0   :  { %s2454_s0 = inlined_call_operand.vmem [shape: f32[16,128], index: 0, kind: input, shape index: {}]   ;;  %s2455_s1 = inlined_call_operand.vmem [shape: f32[16,128], index: 1, kind: input, shape index: {}]   ;;  %s2456_s2 = inlined_call_operand.vmem [shape: bf16[128,128], index: 2, kind: input, shape index: {}]   ;;  %s2457_s3 = inlined_call_operand.hbm [shape: bf16[128,128], index: 3, kind: input, shape index: {}]   ;;  %s2458_s4 = inlined_call_operand.vmem [shape: f32[1,128], index: 4, kind: input, shape index: {}]   ;;  %s2459_s5 = inlined_call_operand.hbm [shape: bf16[128,128], index: 5, kind: input, shape index: {}]   ;;  %s2460_s6 = inlined_call_operand.vmem [shape: f32[1,128], index: 6, kind: input, shape index: {}]   ;;  %s2461_s7 = inlined_call_operand.hbm [shape: bf16[128,128], index: 7, kind: input, shape index: {}]   ;;  %s2462_s8 = inlined_call_operand.vmem [shape: f32[1,128], index: 8, kind: input, shape index: {}]   ;;  %s2463_s9 = inlined_call_operand.hbm [shape: bf16[128,128], index: 9, kind: input, shape index: {}]   ;;  %s2464_s10 = inlined_call_operand.vmem [shape: f32[1,128], index: 10, kind: input, shape index: {}]   ;;  %s2465_s11 = inlined_call_operand.hbm [shape: bf16[128,128], index: 11, kind: input, shape index: {}]   ;;  %s2466_s12 = inlined_call_operand.vmem [shape: f32[1,128], index: 12, kind: input, shape index: {}]   ;;  %s2467_s13 = inlined_call_operand.hbm [shape: bf16[128,128], index: 13, kind: input, shape index: {}]   ;;  %s2468_s14 = inlined_call_operand.vmem [shape: f32[1,128], index: 14, kind: input, shape index: {}]   ;;  %s2469_s15 = inlined_call_operand.vmem [shape: f32[16,128], index: 15, kind: output, shape index: {}]  }
   0x1   :  { %2470 = sst [smem:[#allocation16_spill]] %s2457_s3 }
   0x2   :  { %20 = vsyncpa [#allocation3], 0 }
   0x3   :  { %21 = vsyncpa [#allocation5], 0 }
   0x4   :  { %22 = vsyncpa [#allocation8], 0 }
   0x5   :  { %23 = vsyncpa [#allocation11], 0  ;;  %s2195_s18 = smov 0  }
   0x6 LB: > { %s2201_s19 = sadd.s32 4294967295, %s2103_s18   ;;  %p1511_p0 = scmp.ge.s32.totalorder %s2103_s18, 1  ;;  %s2103_s18 = sphi %s2195_s18, %s29_s18  }
   0x7   : > { %p385_p1 = scmp.lt.s32.totalorder %s2103_s18, 3  ;;  %p1839_p2 = scmp.eq.s32.totalorder %s2201_s19, 0 }
   0x8   : > { %s2105_s21 = smov [#allocation4]   ;;  %s2106_s23 = smov [#allocation7]  }
   0x9   : > { %p2206_p3 = pnand %p1511_p0, %p385_p1  ;;  %s416_s22 = sshll.u32 %s2105_s21, 4  ;;  %s417_s22 = int_to_ptr.vmem [resolvable:$true] %s416_s22 }
   0xa   : > { %s448_s24 = sshll.u32 %s2106_s23, 4  ;;  %s2107_s26 = smov [#allocation2]   ;;  %s2212_s24 = int_to_ptr.vmem [resolvable:$true] %s448_s24 }
   0xb   : > { %p1820_p4 = pneg %p2206_p3  ;;  %s400_s27 = sshll.u32 %s2107_s26, 4  ;;  %s2220_s27 = int_to_ptr.vmem [resolvable:$true] %s400_s27 }
   0xc   : > { %s2108_s28 = smov [#allocation6]   ;;  %s1936_s16 = scalar_lea.vmem %s417_s22, 1024 }
   0xd   : > { %p2216_p5 = pnand %p1839_p2, %p1820_p4  ;;  %s2222_s29 = sshll.u32 %s2108_s28, 4  ;;  %s433_s29 = int_to_ptr.vmem [resolvable:$true] %s2222_s29 }
   0xe   : > { %p1937_p7 = scmp.ne.s32.totalorder %s417_s22, %s1936_s16  ;;  %p1944_p10 = scmp.lt.s32.totalorder %s417_s22, %s417_s22 }
   0xf   : > { %p2226_p6 = pneg %p2216_p5  ;;  %p1945_p11 = scmp.lt.s32.totalorder %s1936_s16, %s1936_s16 }
  0x11   : > { %p1939_p8 = pnand %p1937_p7, %p2226_p6  ;;  %p1946_p12 = por %p1945_p11, %p1944_p10 }
  0x13   : > { %p1940_p9 = pneg %p1939_p8 }
  0x15   : > { %p1947_p13 = pnand %p1946_p12, %p1940_p9 }
  0x17   : > { %1950 = shalt.err (!%p1947_p13)
}
  0x18   : > { %s2109_s17 = smov 64   ;;  %s2110_s21 = smov 4  }
  0x19   : > { %1826 = dma.hbm_to_vmem [thread:$0]  (!%p2216_p5), %s2459_s5, 1024, %s417_s22, [#allocation5], %s2109_s17, %s2109_s17, %s2110_s21  }
  0x1a   : > { %s1962_s28 = scalar_lea.vmem %s2212_s24, 1024  ;;  %p1970_p7 = scmp.lt.s32.totalorder %s2212_s24, %s2212_s24 }
  0x1b   : > { %p1963_p0 = scmp.ne.s32.totalorder %s2212_s24, %s1962_s28  ;;  %p1971_p8 = scmp.lt.s32.totalorder %s1962_s28, %s1962_s28 }
  0x1d   : > { %p1965_p1 = pnand %p1963_p0, %p2226_p6  ;;  %p1972_p9 = por %p1971_p8, %p1970_p7 }
  0x1f   : > { %p1966_p4 = pneg %p1965_p1 }
  0x21   : > { %p1973_p10 = pnand %p1972_p9, %p1966_p4 }
  0x23   : > { %1976 = shalt.err (!%p1973_p10)
}
  0x24   : > { %1832 = dma.hbm_to_vmem [thread:$0]  (!%p2216_p5), %s2463_s9, 1024, %s2212_s24, [#allocation8], %s2109_s17, %s2109_s17, %s2110_s21  }
  0x25   : > { %s1988_s22 = scalar_lea.vmem %s2220_s27, 1024  ;;  %p1996_p0 = scmp.lt.s32.totalorder %s2220_s27, %s2220_s27 }
  0x26   : > { %p1989_p11 = scmp.ne.s32.totalorder %s2220_s27, %s1988_s22  ;;  %p1997_p1 = scmp.lt.s32.totalorder %s1988_s22, %s1988_s22 }
  0x28   : > { %p1991_p12 = pnand %p1989_p11, %p2226_p6  ;;  %p1998_p4 = por %p1997_p1, %p1996_p0 }
  0x2a   : > { %p1992_p13 = pneg %p1991_p12 }
  0x2c   : > { %p1999_p7 = pnand %p1998_p4, %p1992_p13 }
  0x2e   : > { %2002 = shalt.err (!%p1999_p7)
}
  0x2f   : > { %s2474_s3 = sld [smem:[#allocation16_spill]]  ;;  %s2014_s24 = scalar_lea.vmem %s433_s29, 1024 }
  0x30   : > { %p2015_p8 = scmp.ne.s32.totalorder %s433_s29, %s2014_s24  ;;  %p2022_p11 = scmp.lt.s32.totalorder %s433_s29, %s433_s29 }
  0x31   : > { %p2023_p12 = scmp.lt.s32.totalorder %s2014_s24, %s2014_s24 }
  0x32   : > { %p2017_p9 = pnand %p2015_p8, %p2226_p6 }
  0x33   : > { %p2024_p13 = por %p2023_p12, %p2022_p11 }
  0x34   : > { %p2018_p10 = pneg %p2017_p9 }
  0x35   : > { %1823 = dma.hbm_to_vmem [thread:$0]  (!%p2216_p5), %s2474_s3, 1024, %s2220_s27, [#allocation3], %s2109_s17, %s2109_s17, %s2110_s21  }
  0x36   : > { %p2025_p0 = pnand %p2024_p13, %p2018_p10 }
  0x38   : > { %2028 = shalt.err (!%p2025_p0)
}
  0x39   : > { %1829 = dma.hbm_to_vmem [thread:$0]  (!%p2216_p5), %s2461_s7, 1024, %s433_s29, [#allocation5], %s2109_s17, %s2109_s17, %s2110_s21  }
  0x3a   : > { %s2111_s27 = smov [#allocation9]   ;;  %s2112_s26 = smov [#allocation10]  }
  0x3b   : > { %s464_s22 = sshll.u32 %s2111_s27, 4  ;;  %s480_s28 = sshll.u32 %s2112_s26, 4  ;;  %s465_s22 = int_to_ptr.vmem [resolvable:$true] %s464_s22  ;;  %s481_s28 = int_to_ptr.vmem [resolvable:$true] %s480_s28 }
  0x3c   : > { %s2040_s3 = scalar_lea.vmem %s465_s22, 1024  ;;  %p2048_p8 = scmp.lt.s32.totalorder %s465_s22, %s465_s22 }
  0x3d   : > { %p2041_p1 = scmp.ne.s32.totalorder %s465_s22, %s2040_s3  ;;  %p2049_p9 = scmp.lt.s32.totalorder %s2040_s3, %s2040_s3 }
  0x3f   : > { %p2043_p4 = pnand %p2041_p1, %p2226_p6  ;;  %p2050_p10 = por %p2049_p9, %p2048_p8 }
  0x41   : > { %p2044_p7 = pneg %p2043_p4 }
  0x43   : > { %p2051_p11 = pnand %p2050_p10, %p2044_p7 }
  0x45   : > { %2054 = shalt.err (!%p2051_p11)
}
  0x46   : > { %1835 = dma.hbm_to_vmem [thread:$0]  (!%p2216_p5), %s2465_s11, 1024, %s465_s22, [#allocation8], %s2109_s17, %s2109_s17, %s2110_s21  }
  0x47   : > { %s2066_s16 = scalar_lea.vmem %s481_s28, 1024  ;;  %p2074_p1 = scmp.lt.s32.totalorder %s481_s28, %s481_s28 }
  0x48   : > { %p2067_p12 = scmp.ne.s32.totalorder %s481_s28, %s2066_s16  ;;  %p2075_p4 = scmp.lt.s32.totalorder %s2066_s16, %s2066_s16 }
  0x4a   : > { %p2069_p13 = pnand %p2067_p12, %p2226_p6  ;;  %p2076_p7 = por %p2075_p4, %p2074_p1 }
  0x4c   : > { %p2070_p0 = pneg %p2069_p13 }
  0x4e   : > { %p2077_p8 = pnand %p2076_p7, %p2070_p0 }
  0x50   : > { %2080 = shalt.err (!%p2077_p8)
}
  0x51   : > { %1838 = dma.hbm_to_vmem [thread:$0]  (!%p2216_p5), %s2467_s13, 1024, %s481_s28, [#allocation11], %s2109_s17, %s2109_s17, %s2110_s21  }
  0x52   : > { %513 = sbr.rel (%p2206_p3) target bundleno = 1328 (0x530), region = 80 }
  0x57   : > { %2086 = dma.done.wait (%p1839_p2), [#allocation3], 1024  }
  0x58   : > { %2088 = vsyncadd (%p1839_p2), [#allocation3], 4294966272 }
  0x59   : > { %2090 = dma.done.wait (%p1839_p2), [#allocation5], 2048  }
  0x5a   : > { %2092 = vsyncadd (%p1839_p2), [#allocation5], 4294965248 }
  0x5b   : > { %2094 = dma.done.wait (%p1839_p2), [#allocation8], 2048  }
  0x5c   : > { %2096 = vsyncadd (%p1839_p2), [#allocation8], 4294965248 }
  0x5d   : > { %2098 = dma.done.wait (%p1839_p2), [#allocation11], 1024  }
  0x5e   : > { %2100 = vsyncadd (%p1839_p2), [#allocation11], 4294966272  ;;  %v2113_v0 = vmov 0.0   ;;  %vm2114_vm0 = vmmov 0   ;;  %v1869_v1 = vld [vmem:[#allocation2 + $0x38] sm:$0xff]   ;;  %v1871_v3 = vld [vmem:[#allocation2 + $0x30] sm:$0xff]  }
  0x5f   : > { %1656 = vmatprep.subr.bf16.mxu0 %v2113_v0  ;;  %1676 = vmatprep.subr.bf16.mxu1 %v2113_v0  ;;  %v1870_v2 = vld [vmem:[%s2456_s2 + $0x38] sm:$0xff]   ;;  %v1872_v4 = vld [vmem:[%s2456_s2 + $0x30] sm:$0xff]   ;;  %v1873_v5 = vld [vmem:[#allocation2 + $0x28] sm:$0xff]   ;;  %p583_p2 = scmp.lt.s32.totalorder %s2201_s19, 1 }
  0x60   : > { %1672 = vmatprep.mubr.msk.bf16.mxu0 %vm2114_vm0, %v2113_v0  ;;  %1692 = vmatprep.mubr.msk.bf16.mxu1 %vm2114_vm0, %v2113_v0  ;;  %v1874_v6 = vld [vmem:[%s2456_s2 + $0x28] sm:$0xff]   ;;  %v1875_v7 = vld [vmem:[#allocation2 + $0x20] sm:$0xff]   ;;  %v1877_v9 = vld [vmem:[#allocation2 + $0x18] sm:$0xff]  }
  0x61   : > { %1657 = vmatpush3.bf16.msra.mxu0 %v1869_v1  ;;  %1677 = vmatpush3.bf16.msra.mxu1 %v1870_v2  ;;  %v1876_v8 = vld [vmem:[%s2456_s2 + $0x20] sm:$0xff]   ;;  %s2476_s19 = smov (!%p583_p2, %s2201_s19), 1  ;;  %v1878_v10 = vld [vmem:[%s2456_s2 + $0x18] sm:$0xff]   ;;  %v1879_v11 = vld [vmem:[#allocation2 + $0x10] sm:$0xff]  }
  0x62   : > { %1658 = vmatprep.subr.bf16.mxu0 %v2113_v0  ;;  %1678 = vmatprep.subr.bf16.mxu1 %v2113_v0  ;;  %s2350_s24 = sshll.u32 %s2476_s19, 3  ;;  %v1880_v12 = vld [vmem:[%s2456_s2 + $0x10] sm:$0xff]   ;;  %v1881_v13 = vld [vmem:[#allocation2 + $0x8] sm:$0xff]   ;;  %v1883_v15 = vld [vmem:[#allocation2] sm:$0xff]  }
  0x63   : > { %s590_s25 = scalar_lea.vmem %s2455_s1, %s2350_s24  ;;  %v1882_v14 = vld [vmem:[%s2456_s2 + $0x8] sm:$0xff]   ;;  %s586_s27 = scalar_lea.vmem %s2454_s0, %s2350_s24  ;;  %v1884_v17 = vld [vmem:[%s2456_s2] sm:$0xff]   ;;  %v1885_v19 = vld [vmem:[#allocation4 + $0x38] sm:$0xff]  }
  0x64   : > { %v614_v16 = vld [vmem:[%s590_s25] sm:$0xff]  ;;  %v1886_v22 = vld [vmem:[#allocation4 + $0x30] sm:$0xff]   ;;  %v1887_v23 = vld [vmem:[#allocation4 + $0x28] sm:$0xff]   ;;  %s594_s28 = scalar_lea.vmem %s2469_s15, %s2350_s24 }
  0x65   : > { %1659 = vmatpush3.bf16.msra.mxu0 %v1871_v3  ;;  %1679 = vmatpush3.bf16.msra.mxu1 %v1872_v4  ;;  %v596_v18 = vld [vmem:[%s586_s27] sm:$0xff]  ;;  %v615_v20 = vpack.c.bf16 %v614_v16, %v614_v16  ;;  %v1889_v25 = vld [vmem:[#allocation4 + $0x18] sm:$0xff]   ;;  %v1890_v26 = vld [vmem:[#allocation4 + $0x10] sm:$0xff]  }
  0x66   : > { %1660 = vmatprep.subr.bf16.mxu0 %v2113_v0  ;;  %1680 = vmatprep.subr.bf16.mxu1 %v2113_v0  ;;  %v597_v21 = vpack.c.bf16 %v596_v18, %v596_v18  ;;  %v1888_v24 = vld [vmem:[#allocation4 + $0x20] sm:$0xff]   ;;  %v1891_v27 = vld [vmem:[#allocation4 + $0x8] sm:$0xff]   ;;  %v1893_v29 = vld [vmem:[#allocation6 + $0x38] sm:$0xff]  }
  0x67   : > { %v1892_v28 = vld [vmem:[#allocation4] sm:$0xff]   ;;  %v1894_v30 = vld [vmem:[#allocation6 + $0x30] sm:$0xff]   ;;  %v1895_v31 = vld [vmem:[#allocation6 + $0x28] sm:$0xff]  }
  0x68   : > { %v1896_v32 = vld [vmem:[#allocation6 + $0x20] sm:$0xff]   ;;  %v1897_v33 = vld [vmem:[#allocation6 + $0x18] sm:$0xff]   ;;  %v1898_v34 = vld [vmem:[#allocation6 + $0x10] sm:$0xff]  }
  0x69   : > { %1661 = vmatpush3.bf16.msra.mxu0 %v1873_v5  ;;  %1681 = vmatpush3.bf16.msra.mxu1 %v1874_v6  ;;  %v1545_v37 = vld [vmem:[%s2458_s4] ss:$0 sm:$0xff]  ;;  %v1899_v48 = vld [vmem:[#allocation6 + $0x8] sm:$0xff]   ;;  %v1901_v50 = vld [vmem:[#allocation7 + $0x38] sm:$0xff]  }
  0x6a   : > { %1662 = vmatprep.subr.bf16.mxu0 %v2113_v0  ;;  %1682 = vmatprep.subr.bf16.mxu1 %v2113_v0  ;;  %v1900_v49 = vld [vmem:[#allocation6] sm:$0xff]   ;;  %v1902_v51 = vld [vmem:[#allocation7 + $0x30] sm:$0xff]   ;;  %v1903_v52 = vld [vmem:[#allocation7 + $0x28] sm:$0xff]  }
  0x6b   : > { %v1904_v53 = vld [vmem:[#allocation7 + $0x20] sm:$0xff]   ;;  %v1905_v54 = vld [vmem:[#allocation7 + $0x18] sm:$0xff]   ;;  %v1906_v55 = vld [vmem:[#allocation7 + $0x10] sm:$0xff]  }
  0x6c   : > { %v1546_v56 = vld [vmem:[%s2460_s6] ss:$0 sm:$0xff]  ;;  %v1907_v1 = vld [vmem:[#allocation7 + $0x8] sm:$0xff]   ;;  %v1909_v3 = vld [vmem:[#allocation9 + $0x38] sm:$0xff]  }
  0x6d   : > { %1663 = vmatpush3.bf16.msra.mxu0 %v1875_v7  ;;  %1683 = vmatpush3.bf16.msra.mxu1 %v1876_v8  ;;  %v1908_v2 = vld [vmem:[#allocation7] sm:$0xff]   ;;  %v1910_v4 = vld [vmem:[#allocation9 + $0x30] sm:$0xff]   ;;  %v1911_v5 = vld [vmem:[#allocation9 + $0x28] sm:$0xff]  }
  0x6e   : > { %1664 = vmatprep.subr.bf16.mxu0 %v2113_v0  ;;  %1684 = vmatprep.subr.bf16.mxu1 %v2113_v0  ;;  %v1912_v6 = vld [vmem:[#allocation9 + $0x20] sm:$0xff]   ;;  %v1913_v7 = vld [vmem:[#allocation9 + $0x18] sm:$0xff]   ;;  %v1914_v8 = vld [vmem:[#allocation9 + $0x10] sm:$0xff]  }
  0x6f   : > { %v1915_v18 = vld [vmem:[#allocation9 + $0x8] sm:$0xff]  }
  0x71   : > { %1665 = vmatpush3.bf16.msra.mxu0 %v1877_v9  ;;  %1685 = vmatpush3.bf16.msra.mxu1 %v1878_v10  ;;  %v1555_v9 = vld [vmem:[%s2462_s8] ss:$0 sm:$0xff] }
  0x72   : > { %1666 = vmatprep.subr.bf16.mxu0 %v2113_v0  ;;  %1686 = vmatprep.subr.bf16.mxu1 %v2113_v0 }
  0x75   : > { %1667 = vmatpush3.bf16.msra.mxu0 %v1879_v11  ;;  %1687 = vmatpush3.bf16.msra.mxu1 %v1880_v12 }
  0x76   : > { %1668 = vmatprep.subr.bf16.mxu0 %v2113_v0  ;;  %1688 = vmatprep.subr.bf16.mxu1 %v2113_v0 }
  0x79   : > { %1669 = vmatpush3.bf16.msra.mxu0 %v1881_v13  ;;  %1689 = vmatpush3.bf16.msra.mxu1 %v1882_v14 }
  0x7a   : > { %1670 = vmatprep.subr.bf16.mxu0 %v2113_v0  ;;  %1690 = vmatprep.subr.bf16.mxu1 %v2113_v0 }
  0x7d   : > { %1671 = vmatpush3.bf16.msra.mxu0 %v1883_v15  ;;  %1691 = vmatpush3.bf16.msra.mxu1 %v1884_v17 }
  0x7e   : > { %1696 = vmatprep.subr.bf16.mxu0 %v2113_v0  ;;  %1716 = vmatprep.subr.bf16.mxu1 %v2113_v0 }
  0x80   : > { %1673 = vmatmul.mubr.bf16.vlgmr.msra.gmra.mxu0 %v615_v20  ;;  %1693 = vmatmul.mubr.bf16.vlgmr.msra.gmra.mxu1 %v597_v21  ;;  %v1917_v20 = vld [vmem:[#allocation10 + $0x38] sm:$0xff]   ;;  %v1918_v21 = vld [vmem:[#allocation10 + $0x30] sm:$0xff]  }
  0x81   : > { %1697 = vmatpush3.bf16.msra.mxu0 %v1885_v19  ;;  %1712 = vmatprep.mubr.msk.bf16.mxu0 %vm2114_vm0, %v2113_v0  ;;  %v1916_v19 = vld [vmem:[#allocation9] sm:$0xff]  }
  0x82   : > { %1698 = vmatprep.subr.bf16.mxu0 %v2113_v0  ;;  %1732 = vmatprep.mubr.msk.bf16.mxu1 %vm2114_vm0, %v2113_v0 }
  0x83   : > { %1717 = vmatpush3.bf16.msra.mxu1 %v1893_v29 }
  0x84   : > { %1718 = vmatprep.subr.bf16.mxu1 %v2113_v0 }
  0x85   : > { %1699 = vmatpush3.bf16.msra.mxu0 %v1886_v22  ;;  %v1919_v22 = vld [vmem:[#allocation10 + $0x28] sm:$0xff]  }
  0x86   : > { %1700 = vmatprep.subr.bf16.mxu0 %v2113_v0 }
  0x87   : > { %1719 = vmatpush3.bf16.msra.mxu1 %v1894_v30 }
  0x88   : > { %1720 = vmatprep.subr.bf16.mxu1 %v2113_v0 }
  0x89   : > { %1701 = vmatpush3.bf16.msra.mxu0 %v1887_v23  ;;  %v1920_v23 = vld [vmem:[#allocation10 + $0x20] sm:$0xff]  }
  0x8a   : > { %1702 = vmatprep.subr.bf16.mxu0 %v2113_v0 }
  0x8b   : > { %1721 = vmatpush3.bf16.msra.mxu1 %v1895_v31 }
  0x8c   : > { %1722 = vmatprep.subr.bf16.mxu1 %v2113_v0 }
  0x8d   : > { %1703 = vmatpush3.bf16.msra.mxu0 %v1888_v24  ;;  %v1921_v24 = vld [vmem:[#allocation10 + $0x18] sm:$0xff]  }
  0x8e   : > { %1704 = vmatprep.subr.bf16.mxu0 %v2113_v0 }
  0x8f   : > { %1723 = vmatpush3.bf16.msra.mxu1 %v1896_v32 }
  0x90   : > { %1724 = vmatprep.subr.bf16.mxu1 %v2113_v0 }
  0x91   : > { %1705 = vmatpush3.bf16.msra.mxu0 %v1889_v25  ;;  %v1922_v25 = vld [vmem:[#allocation10 + $0x10] sm:$0xff]  }
  0x92   : > { %1706 = vmatprep.subr.bf16.mxu0 %v2113_v0 }
  0x93   : > { %1725 = vmatpush3.bf16.msra.mxu1 %v1897_v33 }
  0x94   : > { %1726 = vmatprep.subr.bf16.mxu1 %v2113_v0 }
  0x95   : > { %1707 = vmatpush3.bf16.msra.mxu0 %v1890_v26  ;;  %v1564_v26 = vld [vmem:[%s2464_s10] ss:$0 sm:$0xff] }
  0x96   : > { %1708 = vmatprep.subr.bf16.mxu0 %v2113_v0 }
  0x97   : > { %1727 = vmatpush3.bf16.msra.mxu1 %v1898_v34  ;;  %v1923_v34 = vld [vmem:[#allocation10 + $0x8] sm:$0xff]  }
  0x98   : > { %1728 = vmatprep.subr.bf16.mxu1 %v2113_v0 }
  0x99   : > { %1709 = vmatpush3.bf16.msra.mxu0 %v1891_v27 }
  0x9a   : > { %1710 = vmatprep.subr.bf16.mxu0 %v2113_v0 }
  0x9b   : > { %1729 = vmatpush3.bf16.msra.mxu1 %v1899_v48 }
  0x9c   : > { %1730 = vmatprep.subr.bf16.mxu1 %v2113_v0 }
  0x9d   : > { %1711 = vmatpush3.bf16.msra.mxu0 %v1892_v28 }
  0x9e   : > { %1736 = vmatprep.subr.bf16.mxu0 %v2113_v0 }
  0x9f   : > { %1731 = vmatpush3.bf16.msra.mxu1 %v1900_v49 }
  0xa0   : > { %1756 = vmatprep.subr.bf16.mxu1 %v2113_v0 }
 0x140   : > { %v714_v35 = vpop.f32.mrf.mxu0  ;;  %v802_v36 = vpop.f32.mrf.mxu1 }
 0x141   : > { %v803_v38 = vadd.f32 %v802_v36, %v714_v35  ;;  %v1924_v35 = vld [vmem:[#allocation10] sm:$0xff]  }
 0x142   : > { %v1674_v39 = vpop.f32.mrf.mxu0  ;;  %v1694_v40 = vpop.f32.mrf.mxu1  ;;  %v1573_v36 = vld [vmem:[%s2466_s12] ss:$0 sm:$0xff] }
 0x143   : > { %v2398_v41 = vadd.f32 %v1545_v37, %v803_v38 }
 0x144   : > { %v717_v42 = vpop.f32.mrf.mxu0  ;;  %v805_v43 = vpop.f32.mrf.mxu1 }
 0x145   : > { %v816_v44 = vmax.f32 %v2398_v41, 0.0 }
 0x146   : > { %v1675_v45 = vpop.f32.mrf.mxu0  ;;  %v1695_v46 = vpop.f32.mrf.mxu1 }
 0x147   : > { %v817_v47 = vpack.c.bf16 %v816_v44, %v816_v44  ;;  %v1582_v45 = vld [vmem:[%s2468_s14] ss:$0 sm:$0xff] }
 0x149   : > { %1713 = vmatmul.mubr.bf16.vlgmr.msra.gmra.mxu0 %v817_v47 }
 0x14a   : > { %1752 = vmatprep.mubr.msk.bf16.mxu0 %vm2114_vm0, %v2113_v0  ;;  %1737 = vmatpush3.bf16.msra.mxu0 %v1901_v50 }
 0x14b   : > { %1738 = vmatprep.subr.bf16.mxu0 %v2113_v0 }
 0x14e   : > { %1739 = vmatpush3.bf16.msra.mxu0 %v1902_v51 }
 0x14f   : > { %1740 = vmatprep.subr.bf16.mxu0 %v2113_v0 }
 0x152   : > { %1741 = vmatpush3.bf16.msra.mxu0 %v1903_v52 }
 0x153   : > { %1742 = vmatprep.subr.bf16.mxu0 %v2113_v0 }
 0x156   : > { %1743 = vmatpush3.bf16.msra.mxu0 %v1904_v53 }
 0x157   : > { %1744 = vmatprep.subr.bf16.mxu0 %v2113_v0 }
 0x15a   : > { %1745 = vmatpush3.bf16.msra.mxu0 %v1905_v54 }
 0x15b   : > { %1746 = vmatprep.subr.bf16.mxu0 %v2113_v0 }
 0x15e   : > { %1747 = vmatpush3.bf16.msra.mxu0 %v1906_v55 }
 0x15f   : > { %1748 = vmatprep.subr.bf16.mxu0 %v2113_v0 }
 0x162   : > { %1749 = vmatpush3.bf16.msra.mxu0 %v1907_v1 }
 0x163   : > { %1750 = vmatprep.subr.bf16.mxu0 %v2113_v0 }
 0x166   : > { %1751 = vmatpush3.bf16.msra.mxu0 %v1908_v2 }
 0x167   : > { %1776 = vmatprep.subr.bf16.mxu0 %v2113_v0 }
 0x209   : > { %v923_v57 = vpop.f32.mrf.mxu0 }
 0x20a   : > { %v924_v58 = vadd.f32 %v1546_v56, %v923_v57 }
 0x20b   : > { %v1714_v59 = vpop.f32.mrf.mxu0 }
 0x20c   : > { %v929_v60 = vmax.f32 %v924_v58, 0.0 }
 0x20d   : > { %v926_v61 = vpop.f32.mrf.mxu0 }
 0x20e   : > { %v930_v62 = vpack.c.bf16 %v929_v60, %v929_v60 }
 0x20f   : > { %v1715_v63 = vpop.f32.mrf.mxu0 }
 0x210   : > { %1733 = vmatmul.mubr.bf16.vlgmr.msra.gmra.mxu1 %v930_v62 }
 0x211   : > { %1772 = vmatprep.mubr.msk.bf16.mxu1 %vm2114_vm0, %v2113_v0  ;;  %1757 = vmatpush3.bf16.msra.mxu1 %v1909_v3 }
 0x212   : > { %1758 = vmatprep.subr.bf16.mxu1 %v2113_v0 }
 0x215   : > { %1759 = vmatpush3.bf16.msra.mxu1 %v1910_v4 }
 0x216   : > { %1760 = vmatprep.subr.bf16.mxu1 %v2113_v0 }
 0x219   : > { %1761 = vmatpush3.bf16.msra.mxu1 %v1911_v5 }
 0x21a   : > { %1762 = vmatprep.subr.bf16.mxu1 %v2113_v0 }
 0x21d   : > { %1763 = vmatpush3.bf16.msra.mxu1 %v1912_v6 }
 0x21e   : > { %1764 = vmatprep.subr.bf16.mxu1 %v2113_v0 }
 0x221   : > { %1765 = vmatpush3.bf16.msra.mxu1 %v1913_v7 }
 0x222   : > { %1766 = vmatprep.subr.bf16.mxu1 %v2113_v0 }
 0x225   : > { %1767 = vmatpush3.bf16.msra.mxu1 %v1914_v8 }
 0x226   : > { %1768 = vmatprep.subr.bf16.mxu1 %v2113_v0 }
 0x229   : > { %1769 = vmatpush3.bf16.msra.mxu1 %v1915_v18 }
 0x22a   : > { %1770 = vmatprep.subr.bf16.mxu1 %v2113_v0 }
 0x22d   : > { %1771 = vmatpush3.bf16.msra.mxu1 %v1916_v19 }
 0x2d0   : > { %v1036_v10 = vpop.f32.mrf.mxu1 }
 0x2d1   : > { %v1037_v11 = vadd.f32 %v1555_v9, %v1036_v10 }
 0x2d2   : > { %v1734_v12 = vpop.f32.mrf.mxu1 }
 0x2d3   : > { %v1042_v13 = vadd.f32 %v1037_v11, %v2398_v41 }
 0x2d4   : > { %v1039_v14 = vpop.f32.mrf.mxu1 }
 0x2d5   : > { %v1043_v15 = vmax.f32 %v1042_v13, 0.0 }
 0x2d6   : > { %v1735_v16 = vpop.f32.mrf.mxu1 }
 0x2d7   : > { %v1044_v17 = vpack.c.bf16 %v1043_v15, %v1043_v15 }
 0x2d9   : > { %1753 = vmatmul.mubr.bf16.vlgmr.msra.gmra.mxu0 %v1044_v17 }
 0x2da   : > { %1792 = vmatprep.mubr.msk.bf16.mxu0 %vm2114_vm0, %v2113_v0  ;;  %1777 = vmatpush3.bf16.msra.mxu0 %v1917_v20 }
 0x2db   : > { %1778 = vmatprep.subr.bf16.mxu0 %v2113_v0 }
 0x2de   : > { %1779 = vmatpush3.bf16.msra.mxu0 %v1918_v21 }
 0x2df   : > { %1780 = vmatprep.subr.bf16.mxu0 %v2113_v0 }
 0x2e2   : > { %1781 = vmatpush3.bf16.msra.mxu0 %v1919_v22 }
 0x2e3   : > { %1782 = vmatprep.subr.bf16.mxu0 %v2113_v0 }
 0x2e6   : > { %1783 = vmatpush3.bf16.msra.mxu0 %v1920_v23 }
 0x2e7   : > { %1784 = vmatprep.subr.bf16.mxu0 %v2113_v0 }
 0x2ea   : > { %1785 = vmatpush3.bf16.msra.mxu0 %v1921_v24 }
 0x2eb   : > { %1786 = vmatprep.subr.bf16.mxu0 %v2113_v0 }
 0x2ee   : > { %1787 = vmatpush3.bf16.msra.mxu0 %v1922_v25 }
 0x2ef   : > { %1788 = vmatprep.subr.bf16.mxu0 %v2113_v0 }
 0x2f2   : > { %1789 = vmatpush3.bf16.msra.mxu0 %v1923_v34 }
 0x2f3   : > { %1790 = vmatprep.subr.bf16.mxu0 %v2113_v0 }
 0x2f6   : > { %1791 = vmatpush3.bf16.msra.mxu0 %v1924_v35 }
 0x399   : > { %v1150_v27 = vpop.f32.mrf.mxu0 }
 0x39a   : > { %v1151_v28 = vadd.f32 %v1564_v26, %v1150_v27 }
 0x39b   : > { %v1754_v29 = vpop.f32.mrf.mxu0 }
 0x39c   : > { %v1156_v30 = vmax.f32 %v1151_v28, 0.0 }
 0x39d   : > { %v1153_v31 = vpop.f32.mrf.mxu0 }
 0x39e   : > { %v1157_v32 = vpack.c.bf16 %v1156_v30, %v1156_v30 }
 0x39f   : > { %v1755_v33 = vpop.f32.mrf.mxu0 }
 0x3a0   : > { %1773 = vmatmul.mubr.bf16.vlgmr.msra.gmra.mxu1 %v1157_v32 }
 0x460   : > { %v1263_v37 = vpop.f32.mrf.mxu1 }
 0x461   : > { %v1264_v38 = vadd.f32 %v1573_v36, %v1263_v37 }
 0x462   : > { %v1774_v39 = vpop.f32.mrf.mxu1 }
 0x463   : > { %v1269_v40 = vadd.f32 %v1264_v38, %v1042_v13 }
 0x464   : > { %v1266_v41 = vpop.f32.mrf.mxu1 }
 0x465   : > { %v1270_v42 = vmax.f32 %v1269_v40, 0.0 }
 0x466   : > { %v1775_v43 = vpop.f32.mrf.mxu1 }
 0x467   : > { %v1271_v44 = vpack.c.bf16 %v1270_v42, %v1270_v42 }
 0x469   : > { %1793 = vmatmul.mubr.bf16.vlgmr.msra.gmra.mxu0 %v1271_v44 }
 0x529   : > { %v1377_v0 = vpop.f32.mrf.mxu0 }
 0x52a   : > { %v1378_v46 = vadd.f32 %v1582_v45, %v1377_v0 }
 0x52b   : > { %v1794_v47 = vpop.f32.mrf.mxu0 }
 0x52c   : > { %1383 = vst [vmem:[%s594_s28] sm:$0xff] %v1378_v46 }
 0x52d   : > { %v1380_v48 = vpop.f32.mrf.mxu0 }
 0x52f   : > { %v1795_v49 = vpop.f32.mrf.mxu0 }
 0x530 PF: > { %s29_s18 = sadd.s32 1, %s2103_s18  }
 0x531   : > { %p26_p3 = scmp.ge.s32.totalorder %s29_s18, 4  }
 0x533   :  { %28 = sbr.rel (!%p26_p3) target bundleno = 6 (0x6), region = 138 }
 0x538   :  { %1403 = vsyncpa [#allocation3], 1 }
 0x539   :  { %1405 = vsyncpa [#allocation3 + $0x1], 1 }
 0x53a   :  { %1406 = vsyncpa [#allocation5], 1 }
 0x53b   :  { %1407 = vsyncpa [#allocation8], 1 }
 0x53c   :  { %1408 = vsyncpa [#allocation11], 1 }

</bundles_post_ra>
